<compile_context>
chip_gen: v6e
topology: v6e:2x2x1
jax: 0.10.0
libtpu: 0.0.40
codegen_flags: <defaults>
</compile_context>

<pallas_src>
import functools
import math

import jax
import jax.numpy as jnp
from jax import lax
from jax.experimental import pallas as pl
from jax.experimental.pallas import tpu as pltpu


# --------------------------------------------------------------------------------------
# Pallas kernel
# --------------------------------------------------------------------------------------
def _agg_exp_gamma_loss_kernel(xa_ref, xc_ref, a_ref, c_ref, lab_a_ref, lab_c_ref,
                               inv_pos_ref, inv_neg_ref, out_ref,
                               acc_pos, acc_all,
                               *, gamma, alpha, tm, tn):
    i = pl.program_id(0)          # anchor row-tile index   (parallel)
    j = pl.program_id(1)          # candidate col-tile index (reduction, last)

    @pl.when(j == 0)
    def _():
        acc_pos[...] = jnp.zeros_like(acc_pos)
        acc_all[...] = jnp.zeros_like(acc_all)

    # Single MXU matmul per tile: gram[candidate, anchor] = <x_c, x_a>  -> (tn, tm) f32.
    gram = lax.dot_general(xc_ref[...], xa_ref[...], (((1,), (1,)), ((), ())),
                           preferred_element_type=jnp.float32)

    # d2[c, a] = ||x_a + eps||^2 + (||x_c||^2 - 2 eps sum_d x_cd) - 2 <x_a, x_c>
    # a_ref: (1, tm) anchor term; c_ref: (tn, 1) candidate term (both host-precomputed).
    # Padded candidate rows carry a large-negative sentinel in c -> d2 clamps to 0 -> dist 0.
    d2 = a_ref[...] + c_ref[...] - 2.0 * gram
    dist = jnp.sqrt(jnp.maximum(d2, 0.0))

    # Minimal mask chain: 2 compares + 1 and + 2 selects.
    # The diagonal is masked explicitly (NOT handled by subtracting the analytic eps*sqrt(D))
    # because the expansion form cancels catastrophically on the diagonal.
    same = lab_c_ref[...] == lab_a_ref[...]                                 # (tn, tm) bool
    cand_idx = j * tn + lax.broadcasted_iota(jnp.int32, (tn, 1), 0)
    anch_idx = i * tm + lax.broadcasted_iota(jnp.int32, (1, tm), 1)
    not_diag = cand_idx != anch_idx

    acc_pos[...] += jnp.sum(jnp.where(jnp.logical_and(same, not_diag), dist, 0.0),
                            axis=0, keepdims=True)
    acc_all[...] += jnp.sum(jnp.where(not_diag, dist, 0.0), axis=0, keepdims=True)

    @pl.when(j == pl.num_programs(1) - 1)
    def _():
        avg_pos = acc_pos[...] * inv_pos_ref[...]
        avg_neg = (acc_all[...] - acc_pos[...]) * inv_neg_ref[...]
        out_ref[...] = (gamma * jnp.exp(alpha * avg_pos)
                        + (1.0 - gamma) * jnp.exp(-alpha * avg_neg))[None]


# --------------------------------------------------------------------------------------
# Wrapper / tiling heuristics
# --------------------------------------------------------------------------------------
def _round_up(v, m):
    return ((v + m - 1) // m) * m


def _vmem_capacity_bytes():
    try:
        return int(pltpu.get_tpu_info().vmem_capacity_bytes)
    except Exception:
        return 64 << 20          # v7x per-TensorCore capacity: conservative fallback


def _pick_tiles(n, d_pad, itemsize):
    """Pick (tm, tn): anchor/lane tile (resident across the reduction) and candidate tile."""
    # Budget the per-step working set to roughly half of physical VMEM (double-buffered x
    # tiles + (tn, tm) f32 intermediates). v7x only has 64 MiB per TensorCore.
    budget = max(16 << 20, _vmem_capacity_bytes() // 2 - (8 << 20))

    # Bigger tm => candidate rows are re-streamed fewer times (HBM traffic ~ N^2*D/tm), but
    # keep at least two row tiles when N allows so v7x's second TensorCore gets work.
    tm = 512
    while tm > 128 and n <= tm:
        tm //= 2
    # Small-D steps are per-step-overhead / VPU-chain dominated -> larger candidate tile.
    tn = 512 if d_pad <= 256 else 256
    while tn > 128 and n <= tn // 2:
        tn //= 2

    def est(tm_, tn_):
        x_tiles = 2 * (tm_ + tn_) * d_pad * itemsize     # double-buffered xa/xc blocks
        inter = 6 * tm_ * tn_ * 4                         # (tn, tm) f32 temporaries
        return x_tiles + inter

    while est(tm, tn) > budget and tn > 128:
        tn //= 2
    while est(tm, tn) > budget and tm > 128:
        tm //= 2
    return tm, tn


@functools.partial(jax.jit,
                   static_argnames=("gamma", "alpha", "eps", "tm", "tn", "compute_dtype"))
def _loss_pallas(x, label, *, gamma, alpha, eps, tm=None, tn=None,
                 compute_dtype="bfloat16"):
    x = jnp.asarray(x)
    label = jnp.asarray(label)
    n, d = x.shape

    if str(compute_dtype) in ("bfloat16", "bf16"):
        cdt, itemsize = jnp.bfloat16, 2
    elif str(compute_dtype) in ("float32", "f32", "fp32"):
        cdt, itemsize = jnp.float32, 4
    else:
        raise ValueError(f"unsupported compute_dtype: {compute_dtype}")

    d_pad = _round_up(d, 128)
    if tm is None or tn is None:
        auto_tm, auto_tn = _pick_tiles(n, d_pad, itemsize)
        tm = auto_tm if tm is None else tm
        tn = auto_tn if tn is None else tn
    if tm % 128 != 0:
        raise ValueError("tm must be a multiple of 128 (lane axis)")
    if tn % 8 != 0:
        raise ValueError("tn must be a multiple of 8 (sublane axis)")
    n_pad = _round_up(n, math.lcm(tm, tn))

    # Round x once; every derived quantity uses the same rounded values so the expansion-form
    # distance stays self-consistent (keeps the diagonal/near-duplicate cancellation benign).
    xq = x.astype(cdt)
    xq32 = xq.astype(jnp.float32)
    x_pad = jnp.zeros((n_pad, d_pad), cdt).at[:n, :d].set(xq)

    epsf = jnp.float32(eps)
    # Per-anchor term a_i = ||x_i + eps||^2 ; per-candidate term c_j = sum_d(x_jd^2 - 2 eps x_jd).
    a = jnp.sum(jnp.square(xq32 + epsf), axis=1)
    c = jnp.sum(xq32 * (xq32 - 2.0 * epsf), axis=1)
    a_row = jnp.zeros((1, n_pad), jnp.float32).at[0, :n].set(a)
    # Padded candidate rows: large-negative sentinel -> d2 clamps to 0 -> dist == 0, so padded
    # candidates contribute nothing (removes the per-element `valid` mask from the kernel).
    c_col = jnp.full((n_pad, 1), -1e30, jnp.float32).at[:n, 0].set(c)

    lab = label.astype(jnp.int32).reshape(n)
    # Pad labels with 0: padded candidates already contribute nothing (dist == 0) and padded
    # anchor lanes are discarded below, so no sentinel label (and no overflow risk) is needed.
    lab_row = jnp.zeros((1, n_pad), jnp.int32).at[0, :n].set(lab)
    lab_col = jnp.zeros((n_pad, 1), jnp.int32).at[:n, 0].set(lab)

    # Positive/negative counts depend only on labels -> tiny O(N^2) int work, once.
    same_cnt = jnp.sum(lab[None, :] == lab[:, None], axis=1)
    inv_pos = 1.0 / jnp.maximum(same_cnt - 1, 1).astype(jnp.float32)
    inv_neg = 1.0 / jnp.maximum(n - same_cnt, 1).astype(jnp.float32)
    inv_pos_row = jnp.zeros((1, n_pad), jnp.float32).at[0, :n].set(inv_pos)
    inv_neg_row = jnp.zeros((1, n_pad), jnp.float32).at[0, :n].set(inv_neg)

    n_row_tiles = n_pad // tm
    n_col_tiles = n_pad // tn

    # TODO(synk): for d_pad >~ 4096 on 64 MiB-VMEM parts (v7x) a K-tiling grid axis (or
    #             pltpu.emit_pipeline over D) would keep tiles large; here we only shrink tm/tn.

    est_bytes = (2 * (tm + tn) * d_pad * itemsize        # double-buffered x tiles
                 + 6 * tm * tn * 4                        # (tn, tm) f32 intermediates
                 + 64 * (tm + tn) + (2 << 20))            # side inputs / out / scratch / slack
    vmem_cap = _vmem_capacity_bytes()
    vmem_limit = int(min(vmem_cap * 3 // 4, max(32 << 20, est_bytes * 5 // 4)))

    kernel = functools.partial(_agg_exp_gamma_loss_kernel,
                               gamma=float(gamma), alpha=float(alpha), tm=tm, tn=tn)

    out = pl.pallas_call(
        kernel,
        out_shape=jax.ShapeDtypeStruct((n_row_tiles, 1, tm), jnp.float32),
        grid_spec=pltpu.PrefetchScalarGridSpec(
            num_scalar_prefetch=0,
            grid=(n_row_tiles, n_col_tiles),
            in_specs=[
                pl.BlockSpec((tm, d_pad), lambda i, j: (i, 0)),   # anchor rows of x
                pl.BlockSpec((tn, d_pad), lambda i, j: (j, 0)),   # candidate rows of x
                pl.BlockSpec((1, tm), lambda i, j: (0, i)),       # ||x_a + eps||^2 (lane row)
                pl.BlockSpec((tn, 1), lambda i, j: (j, 0)),       # candidate norm term (col)
                pl.BlockSpec((1, tm), lambda i, j: (0, i)),       # anchor labels (lane row)
                pl.BlockSpec((tn, 1), lambda i, j: (j, 0)),       # candidate labels (col)
                pl.BlockSpec((1, tm), lambda i, j: (0, i)),       # 1 / pos_count
                pl.BlockSpec((1, tm), lambda i, j: (0, i)),       # 1 / neg_count
            ],
            out_specs=pl.BlockSpec((1, 1, tm), lambda i, j: (i, 0, 0)),
            scratch_shapes=[pltpu.VMEM((1, tm), jnp.float32),     # acc_pos
                            pltpu.VMEM((1, tm), jnp.float32)],    # acc_all
        ),
        compiler_params=pltpu.CompilerParams(
            dimension_semantics=("parallel", "arbitrary"),
            vmem_limit_bytes=vmem_limit),
    )(x_pad, x_pad, a_row, c_col, lab_row, lab_col, inv_pos_row, inv_neg_row)

    # Lane-dense per-anchor terms; drop padded anchors and do the tiny final sum here.
    return jnp.sum(out.reshape(-1)[:n])


# --------------------------------------------------------------------------------------
# Pure-JAX reference of the reconstructed loss (correctness checking only).
# --------------------------------------------------------------------------------------
def _loss_ref(x, label, gamma, alpha, eps):
    x = x.astype(jnp.float32)
    dif = x[:, None, :] - x[None, :, :] + eps
    dist = jnp.sqrt(jnp.sum(dif * dif, axis=-1))
    same = label[:, None] == label[None, :]
    off = ~jnp.eye(x.shape[0], dtype=bool)
    pos = (same & off).astype(jnp.float32)
    neg = (~same).astype(jnp.float32)
    avg_pos = jnp.sum(pos * dist, axis=1) / jnp.maximum(jnp.sum(pos, axis=1), 1.0)
    avg_neg = jnp.sum(neg * dist, axis=1) / jnp.maximum(jnp.sum(neg, axis=1), 1.0)
    return jnp.sum(gamma * jnp.exp(alpha * avg_pos)
                   + (1.0 - gamma) * jnp.exp(-alpha * avg_neg))


# --------------------------------------------------------------------------------------
# Module-level wrapper mirroring the PyTorch class (glue only; hot path is in Pallas).
# --------------------------------------------------------------------------------------
class MyAggregateExponentialGammaLossID:
    def __init__(self, alpha=1.0, gamma=0.8, drop_loss=0, drop_loss_freq=0, eps=1e-6,
                 compute_dtype="bfloat16"):
        self.gamma = gamma
        self.alpha = alpha
        self.drop_loss = drop_loss
        self.drop_loss_freq = drop_loss_freq
        self.eps = eps
        self.compute_dtype = compute_dtype
        self.count = 0
        self.idx = None
        print('Creating myAggExpGammaLossID with gamma: {}, alpha: {}'.format(self.gamma, self.alpha))

    def __call__(self, x, label, avgPosDist=None, avgNegDist=None, Lw=None):
        if self.drop_loss_freq:
            if self.count % self.drop_loss_freq == 0:
                self.count = 0
            self.count += 1
        # TODO(synk): stochastic feature-row dropping (drop_loss > 0) relies on stateful
        #             torch.rand; only the default drop_loss == 0 path is implemented here.
        if Lw is not None:
            # cirtorch-style whitening glue in plain JAX (x is (N, D) here).
            x = (x - Lw['m'].reshape(1, -1)) @ Lw['P'].T
        return _loss_pallas(x, label, gamma=self.gamma, alpha=self.alpha, eps=self.eps,
                            compute_dtype=self.compute_dtype)


if __name__ == "__main__":
    key = jax.random.PRNGKey(0)
    k1, k2, k3, k4 = jax.random.split(key, 4)

    loss_mod = MyAggregateExponentialGammaLossID(alpha=1.0, gamma=0.8)

    def rel_err(a, b):
        return jnp.abs(a - b) / jnp.maximum(jnp.abs(b), 1e-6)

    # Case 1: multi-tile grid (2x2 tiles, row padding, on/off block-diagonal tiles),
    # default bf16 streaming path -> compare against the bf16-rounded-input reference.
    n1, d1 = 200, 32
    x1 = jax.random.normal(k1, (n1, d1), dtype=jnp.float32)
    l1 = jax.random.randint(k2, (n1,), 0, 8, dtype=jnp.int32)
    out1 = jax.block_until_ready(
        _loss_pallas(x1, l1, gamma=0.8, alpha=1.0, eps=1e-6, tm=128, tn=128))
    ref1 = _loss_ref(x1.astype(jnp.bfloat16), l1, 0.8, 1.0, 1e-6)
    assert jnp.isfinite(out1), out1
    assert rel_err(out1, ref1) < 2e-3, (out1, ref1)

    # Case 2: module wrapper, auto tile heuristic (single tile, feature-dim padding).
    n2, d2 = 96, 48
    x2 = jax.random.normal(k3, (n2, d2), dtype=jnp.float32)
    l2 = jax.random.randint(k4, (n2,), 0, 5, dtype=jnp.int32)
    out2 = jax.block_until_ready(loss_mod(x2, l2))
    ref2 = _loss_ref(x2.astype(jnp.bfloat16), l2, 0.8, 1.0, 1e-6)
    assert jnp.isfinite(out2), out2
    assert rel_err(out2, ref2) < 2e-3, (out2, ref2)

    # Case 3: full-precision path (compute_dtype="float32") against the f32 reference
    # (looser bound: expansion form + MXU f32 passes differ slightly from the direct form).
    out3 = jax.block_until_ready(
        _loss_pallas(x2, l2, gamma=0.8, alpha=1.0, eps=1e-6, compute_dtype="float32"))
    ref3 = _loss_ref(x2, l2, 0.8, 1.0, 1e-6)
    assert jnp.isfinite(out3), out3
    assert rel_err(out3, ref3) < 5e-2, (out3, ref3)

    print("KERNEL_OK")
</pallas_src>

<mosaic_0001>
module attributes {stable_mosaic.version = 11 : i64} {
  func.func @_agg_exp_gamma_loss_kernel(%arg0: i32, %arg1: i32, %arg2: memref<128x128xbf16, #tpu.memory_space<vmem>>, %arg3: memref<128x128xbf16, #tpu.memory_space<vmem>>, %arg4: memref<1x128xf32, #tpu.memory_space<vmem>>, %arg5: memref<128x1xf32, #tpu.memory_space<vmem>>, %arg6: memref<1x128xi32, #tpu.memory_space<vmem>>, %arg7: memref<128x1xi32, #tpu.memory_space<vmem>>, %arg8: memref<1x128xf32, #tpu.memory_space<vmem>>, %arg9: memref<1x128xf32, #tpu.memory_space<vmem>>, %arg10: memref<1x1x128xf32, #tpu.memory_space<vmem>>, %arg11: memref<1x128xf32, #tpu.memory_space<vmem>>, %arg12: memref<1x128xf32, #tpu.memory_space<vmem>>) attributes {dimension_semantics = [#tpu.dimension_semantics<parallel>, #tpu.dimension_semantics<arbitrary>], iteration_bounds = array<i64: 2, 2>, scalar_prefetch = 0 : i64, scratch_operands = 2 : i64, tpu.core_type = #tpu.core_type<tc>, window_params = [{transform_indices = @transform_0, window_bounds = array<i64: 128, 128>}, {transform_indices = @transform_1, window_bounds = array<i64: 128, 128>}, {transform_indices = @transform_2, window_bounds = array<i64: 1, 128>}, {transform_indices = @transform_3, window_bounds = array<i64: 128, 1>}, {transform_indices = @transform_4, window_bounds = array<i64: 1, 128>}, {transform_indices = @transform_5, window_bounds = array<i64: 128, 1>}, {transform_indices = @transform_6, window_bounds = array<i64: 1, 128>}, {transform_indices = @transform_7, window_bounds = array<i64: 1, 128>}, {transform_indices = @transform_8, window_bounds = array<i64: 1, 1, 128>}]} {
    %c0_i32 = arith.constant 0 : i32
    %0 = arith.cmpi eq, %arg1, %c0_i32 : i32
    %1 = arith.extui %0 : i1 to i32
    %c0_i32_0 = arith.constant 0 : i32
    %2 = arith.cmpi ne, %1, %c0_i32_0 : i32
    scf.if %2 {
      %cst_28 = arith.constant 0.000000e+00 : f32
      %51 = vector.broadcast %cst_28 : f32 to vector<1x128xf32>
      %c0_29 = arith.constant 0 : index
      %c0_30 = arith.constant 0 : index
      %52 = vector.load %arg11[%c0_29, %c0_30] : memref<1x128xf32, #tpu.memory_space<vmem>>, vector<1x128xf32>
      tpu.vector_store %arg11[%c0_29, %c0_30], %51 {strides = array<i32>} : memref<1x128xf32, #tpu.memory_space<vmem>>, vector<1x128xf32>,
      %cst_31 = arith.constant 0.000000e+00 : f32
      %53 = vector.broadcast %cst_31 : f32 to vector<1x128xf32>
      %c0_32 = arith.constant 0 : index
      %c0_33 = arith.constant 0 : index
      %54 = vector.load %arg12[%c0_32, %c0_33] : memref<1x128xf32, #tpu.memory_space<vmem>>, vector<1x128xf32>
      tpu.vector_store %arg12[%c0_32, %c0_33], %53 {strides = array<i32>} : memref<1x128xf32, #tpu.memory_space<vmem>>, vector<1x128xf32>,
    } else {
    }
    %c0 = arith.constant 0 : index
    %c0_1 = arith.constant 0 : index
    %3 = vector.load %arg3[%c0, %c0_1] : memref<128x128xbf16, #tpu.memory_space<vmem>>, vector<128x128xbf16>
    %c0_2 = arith.constant 0 : index
    %c0_3 = arith.constant 0 : index
    %4 = vector.load %arg2[%c0_2, %c0_3] : memref<128x128xbf16, #tpu.memory_space<vmem>>, vector<128x128xbf16>
    %cst = arith.constant dense<0.000000e+00> : vector<128x128xf32>
    %5 = tpu.matmul %3, %4, %cst {dimension_numbers = #tpu.dot_dimension_numbers<[1], [1], [0], [0], [0, 0, 1, 0], [], []>} : vector<128x128xbf16>, vector<128x128xbf16>, vector<128x128xf32> -> vector<128x128xf32>
    %c0_4 = arith.constant 0 : index
    %c0_5 = arith.constant 0 : index
    %6 = vector.load %arg4[%c0_4, %c0_5] : memref<1x128xf32, #tpu.memory_space<vmem>>, vector<1x128xf32>
    %c0_6 = arith.constant 0 : index
    %c0_7 = arith.constant 0 : index
    %7 = vector.load %arg5[%c0_6, %c0_7] : memref<128x1xf32, #tpu.memory_space<vmem>>, vector<128x1xf32>
    %8 = vector.broadcast %6 : vector<1x128xf32> to vector<128x128xf32>
    %9 = vector.broadcast %7 : vector<128x1xf32> to vector<128x128xf32>
    %10 = arith.addf %8, %9 : vector<128x128xf32>
    %cst_8 = arith.constant 2.000000e+00 : f32
    %11 = vector.broadcast %cst_8 : f32 to vector<128x128xf32>
    %12 = arith.mulf %11, %5 : vector<128x128xf32>
    %13 = arith.subf %10, %12 : vector<128x128xf32>
    %cst_9 = arith.constant 0.000000e+00 : f32
    %14 = vector.broadcast %cst_9 : f32 to vector<128x128xf32>
    %15 = arith.maximumf %13, %14 : vector<128x128xf32>
    %16 = math.sqrt %15 : vector<128x128xf32>
    %c0_10 = arith.constant 0 : index
    %c0_11 = arith.constant 0 : index
    %17 = vector.load %arg7[%c0_10, %c0_11] : memref<128x1xi32, #tpu.memory_space<vmem>>, vector<128x1xi32>
    %c0_12 = arith.constant 0 : index
    %c0_13 = arith.constant 0 : index
    %18 = vector.load %arg6[%c0_12, %c0_13] : memref<1x128xi32, #tpu.memory_space<vmem>>, vector<1x128xi32>
    %19 = vector.broadcast %17 : vector<128x1xi32> to vector<128x128xi32>
    %20 = vector.broadcast %18 : vector<1x128xi32> to vector<128x128xi32>
    %21 = arith.cmpi eq, %19, %20 : vector<128x128xi32>
    %c128_i32 = arith.constant 128 : i32
    %22 = arith.muli %arg1, %c128_i32 : i32
    %23 = tpu.iota {dimensions = array<i32: 0>} : vector<128x1xi32>
    %24 = vector.broadcast %22 : i32 to vector<128x1xi32>
    %25 = arith.addi %24, %23 : vector<128x1xi32>
    %c128_i32_14 = arith.constant 128 : i32
    %26 = arith.muli %arg0, %c128_i32_14 : i32
    %27 = tpu.iota {dimensions = array<i32: 1>} : vector<1x128xi32>
    %28 = vector.broadcast %26 : i32 to vector<1x128xi32>
    %29 = arith.addi %28, %27 : vector<1x128xi32>
    %30 = vector.broadcast %25 : vector<128x1xi32> to vector<128x128xi32>
    %31 = vector.broadcast %29 : vector<1x128xi32> to vector<128x128xi32>
    %32 = arith.cmpi ne, %30, %31 : vector<128x128xi32>
    %c0_15 = arith.constant 0 : index
    %c0_16 = arith.constant 0 : index
    %33 = vector.load %arg11[%c0_15, %c0_16] : memref<1x128xf32, #tpu.memory_space<vmem>>, vector<1x128xf32>
    %34 = arith.andi %21, %32 : vector<128x128xi1>
    %cst_17 = arith.constant 0.000000e+00 : f32
    %35 = vector.broadcast %cst_17 : f32 to vector<128x128xf32>
    %36 = arith.select %34, %16, %35 : vector<128x128xi1>, vector<128x128xf32>
    %cst_18 = arith.constant dense<0.000000e+00> : vector<128xf32>
    %37 = vector.multi_reduction <add>, %36, %cst_18 [0] : vector<128x128xf32> to vector<128xf32>
    %38 = vector.shape_cast %37 : vector<128xf32> to vector<1x128xf32>
    %39 = arith.addf %33, %38 : vector<1x128xf32>
    %c0_19 = arith.constant 0 : index
    %c0_20 = arith.constant 0 : index
    %40 = vector.load %arg11[%c0_19, %c0_20] : memref<1x128xf32, #tpu.memory_space<vmem>>, vector<1x128xf32>
    tpu.vector_store %arg11[%c0_19, %c0_20], %39 {strides = array<i32>} : memref<1x128xf32, #tpu.memory_space<vmem>>, vector<1x128xf32>,
    %c0_21 = arith.constant 0 : index
    %c0_22 = arith.constant 0 : index
    %41 = vector.load %arg12[%c0_21, %c0_22] : memref<1x128xf32, #tpu.memory_space<vmem>>, vector<1x128xf32>
    %cst_23 = arith.constant 0.000000e+00 : f32
    %42 = vector.broadcast %cst_23 : f32 to vector<128x128xf32>
    %43 = arith.select %32, %16, %42 : vector<128x128xi1>, vector<128x128xf32>
    %cst_24 = arith.constant dense<0.000000e+00> : vector<128xf32>
    %44 = vector.multi_reduction <add>, %43, %cst_24 [0] : vector<128x128xf32> to vector<128xf32>
    %45 = vector.shape_cast %44 : vector<128xf32> to vector<1x128xf32>
    %46 = arith.addf %41, %45 : vector<1x128xf32>
    %c0_25 = arith.constant 0 : index
    %c0_26 = arith.constant 0 : index
    %47 = vector.load %arg12[%c0_25, %c0_26] : memref<1x128xf32, #tpu.memory_space<vmem>>, vector<1x128xf32>
    tpu.vector_store %arg12[%c0_25, %c0_26], %46 {strides = array<i32>} : memref<1x128xf32, #tpu.memory_space<vmem>>, vector<1x128xf32>,
    %c1_i32 = arith.constant 1 : i32
    %48 = arith.cmpi eq, %arg1, %c1_i32 : i32
    %49 = arith.extui %48 : i1 to i32
    %c0_i32_27 = arith.constant 0 : i32
    %50 = arith.cmpi ne, %49, %c0_i32_27 : i32
    scf.if %50 {
      %c0_28 = arith.constant 0 : index
      %c0_29 = arith.constant 0 : index
      %51 = vector.load %arg11[%c0_28, %c0_29] : memref<1x128xf32, #tpu.memory_space<vmem>>, vector<1x128xf32>
      %c0_30 = arith.constant 0 : index
      %c0_31 = arith.constant 0 : index
      %52 = vector.load %arg8[%c0_30, %c0_31] : memref<1x128xf32, #tpu.memory_space<vmem>>, vector<1x128xf32>
      %53 = arith.mulf %51, %52 : vector<1x128xf32>
      %c0_32 = arith.constant 0 : index
      %c0_33 = arith.constant 0 : index
      %54 = vector.load %arg12[%c0_32, %c0_33] : memref<1x128xf32, #tpu.memory_space<vmem>>, vector<1x128xf32>
      %c0_34 = arith.constant 0 : index
      %c0_35 = arith.constant 0 : index
      %55 = vector.load %arg11[%c0_34, %c0_35] : memref<1x128xf32, #tpu.memory_space<vmem>>, vector<1x128xf32>
      %56 = arith.subf %54, %55 : vector<1x128xf32>
      %c0_36 = arith.constant 0 : index
      %c0_37 = arith.constant 0 : index
      %57 = vector.load %arg9[%c0_36, %c0_37] : memref<1x128xf32, #tpu.memory_space<vmem>>, vector<1x128xf32>
      %58 = arith.mulf %56, %57 : vector<1x128xf32>
      %cst_38 = arith.constant 1.000000e+00 : f32
      %59 = vector.broadcast %cst_38 : f32 to vector<1x128xf32>
      %60 = arith.mulf %59, %53 : vector<1x128xf32>
      %61 = math.exp %60 : vector<1x128xf32>
      %cst_39 = arith.constant 8.000000e-01 : f32
      %62 = vector.broadcast %cst_39 : f32 to vector<1x128xf32>
      %63 = arith.mulf %62, %61 : vector<1x128xf32>
      %cst_40 = arith.constant -1.000000e+00 : f32
      %64 = vector.broadcast %cst_40 : f32 to vector<1x128xf32>
      %65 = arith.mulf %64, %58 : vector<1x128xf32>
      %66 = math.exp %65 : vector<1x128xf32>
      %cst_41 = arith.constant 2.000000e-01 : f32
      %67 = vector.broadcast %cst_41 : f32 to vector<1x128xf32>
      %68 = arith.mulf %67, %66 : vector<1x128xf32>
      %69 = arith.addf %63, %68 : vector<1x128xf32>
      %70 = vector.shape_cast %69 : vector<1x128xf32> to vector<1x1x128xf32>
      %c0_42 = arith.constant 0 : index
      %c0_43 = arith.constant 0 : index
      %c0_44 = arith.constant 0 : index
      %71 = vector.load %arg10[%c0_42, %c0_43, %c0_44] : memref<1x1x128xf32, #tpu.memory_space<vmem>>, vector<1x1x128xf32>
      tpu.vector_store %arg10[%c0_42, %c0_43, %c0_44], %70 {strides = array<i32>} : memref<1x1x128xf32, #tpu.memory_space<vmem>>, vector<1x1x128xf32>,
    } else {
    }
    return
  }
  func.func @transform_0(%arg0: i32, %arg1: i32) -> (i32, i32) {
    %c0_i32 = arith.constant 0 : i32
    %c0_i32_0 = arith.constant 0 : i32
    return %arg0, %c0_i32 : i32, i32
  }
  func.func @transform_1(%arg0: i32, %arg1: i32) -> (i32, i32) {
    %c0_i32 = arith.constant 0 : i32
    %c0_i32_0 = arith.constant 0 : i32
    return %arg1, %c0_i32 : i32, i32
  }
  func.func @transform_2(%arg0: i32, %arg1: i32) -> (i32, i32) {
    %c0_i32 = arith.constant 0 : i32
    %c0_i32_0 = arith.constant 0 : i32
    return %c0_i32, %arg0 : i32, i32
  }
  func.func @transform_3(%arg0: i32, %arg1: i32) -> (i32, i32) {
    %c0_i32 = arith.constant 0 : i32
    %c0_i32_0 = arith.constant 0 : i32
    return %arg1, %c0_i32 : i32, i32
  }
  func.func @transform_4(%arg0: i32, %arg1: i32) -> (i32, i32) {
    %c0_i32 = arith.constant 0 : i32
    %c0_i32_0 = arith.constant 0 : i32
    return %c0_i32, %arg0 : i32, i32
  }
  func.func @transform_5(%arg0: i32, %arg1: i32) -> (i32, i32) {
    %c0_i32 = arith.constant 0 : i32
    %c0_i32_0 = arith.constant 0 : i32
    return %arg1, %c0_i32 : i32, i32
  }
  func.func @transform_6(%arg0: i32, %arg1: i32) -> (i32, i32) {
    %c0_i32 = arith.constant 0 : i32
    %c0_i32_0 = arith.constant 0 : i32
    return %c0_i32, %arg0 : i32, i32
  }
  func.func @transform_7(%arg0: i32, %arg1: i32) -> (i32, i32) {
    %c0_i32 = arith.constant 0 : i32
    %c0_i32_0 = arith.constant 0 : i32
    return %c0_i32, %arg0 : i32, i32
  }
  func.func @transform_8(%arg0: i32, %arg1: i32) -> (i32, i32, i32) {
    %c0_i32 = arith.constant 0 : i32
    %c0_i32_0 = arith.constant 0 : i32
    %c0_i32_1 = arith.constant 0 : i32
    return %arg0, %c0_i32, %c0_i32_0 : i32, i32, i32
  }
}

</mosaic_0001>

<bundles_post_ra>
// kernel: _loss_pallas.1
= control target key start
LH: loop header
LB: loop body
LE: loop exit
PB: predicated region body
PF: predicated region fallthrough
CT: control target
= control target key end

     0   :  { %s1620_s27 = smov 0   ;;  %s1622_s28 = smov 0   ;;  %s2340_s0 = inlined_call_operand.vmem [shape: bf16[256,128], index: 0, kind: input, shape index: {}, may-alias: {0,1}]   ;;  %s2341_s1 = inlined_call_operand.vmem [shape: bf16[256,128], index: 1, kind: input, shape index: {}, may-alias: {0,1}]   ;;  %s2342_s2 = inlined_call_operand.vmem [shape: f32[1,256], index: 2, kind: input, shape index: {}]   ;;  %s2343_s3 = inlined_call_operand.vmem [shape: f32[256,1], index: 3, kind: input, shape index: {}]   ;;  %s2344_s4 = inlined_call_operand.vmem [shape: s32[1,256], index: 4, kind: input, shape index: {}]   ;;  %s2345_s5 = inlined_call_operand.vmem [shape: s32[256,1], index: 5, kind: input, shape index: {}]   ;;  %s2346_s6 = inlined_call_operand.vmem [shape: f32[1,256], index: 6, kind: input, shape index: {}]   ;;  %s2347_s7 = inlined_call_operand.vmem [shape: f32[1,256], index: 7, kind: input, shape index: {}]   ;;  %s2348_s8 = inlined_call_operand.vmem [shape: f32[2,1,128], index: 8, kind: output, shape index: {}]  }
   0x1   :  { %2350 = sst [smem:[#allocation7_spill]] %s2340_s0  ;;  %s1624_s29 = smov 0  }
   0x2   :  { %2351 = sst [smem:[#allocation8_spill]] %s2341_s1  ;;  %s1626_s30 = smov 0  }
   0x3   :  { %2352 = sst [smem:[#allocation9_spill]] %s2343_s3  ;;  %s1628_s9 = smov 0  }
   0x4 LB: > { %2353 = sst [smem:[#allocation4_spill]] %s1567_s30  ;;  %s27_s10 = sadd.s32 1, %s1563_s29  ;;  %s1571_s9 = sphi %s1628_s9, %s18_s9   ;;  %s1567_s30 = sphi %s1626_s30, %s2388_s30   ;;  %s1563_s29 = sphi %s1624_s29, %s2390_s29   ;;  %s1559_s28 = sphi %s1622_s28, %s2386_s28   ;;  %s1555_s27 = sphi %s1620_s27, %s2389_s27  }
   0x5   : > { %s30_s11 = sadd.s32 1, %s1567_s30  ;;  %p28_p0 = scmp.ge.s32.totalorder %s27_s10, 2 }
   0x6   : > { %p1340_p1 = scmp.ge.s32.totalorder %s1571_s9, 1  ;;  %p340_p2 = scmp.lt.s32.totalorder %s1571_s9, 5 }
   0x7   : > { %s2392_s10 = smov (%p28_p0, %s27_s10), 0  ;;  %s2394_s11 = smov (!%p28_p0, %s30_s11), %s1567_s30 }
   0x8   : > { %2354 = sst [smem:[#allocation5_spill]] %s2392_s10  ;;  %p341_p3 = pnand %p1340_p1, %p340_p2 }
   0x9   : > { %p32_p4 = scmp.ge.s32.totalorder %s2394_s11, 2  ;;  %s1341_s12 = sshll.u32 (!%p341_p3), %s1559_s28, 4 }
   0xa   : > { %344 = sbr.rel (%p341_p3) target bundleno = 415 (0x19f), region = 52  ;;  %s1343_s13 = sshll.u32 (!%p341_p3), %s1555_s27, 4 }
   0xb   : > { %s2396_s11 = smov (%p32_p4, %s2394_s11), 0  ;;  %p400_p5 = scmp.lt.s32.totalorder (!%p341_p3), %s1341_s12, 31 }
   0xc   : > { %2355 = sst [smem:[#allocation6_spill]] %s2396_s11  ;;  %p406_p6 = scmp.lt.s32.totalorder (!%p341_p3), %s1343_s13, 31 }
   0xd   : > { %p411_p7 = scmp.lt.s32.totalorder (!%p341_p3), %s1559_s28, 1  ;;  %s2356_s0 = sld [smem:[#allocation7_spill]] (!%p341_p3) }
   0xe   : > { %s2357_s1 = sld [smem:[#allocation8_spill]] (!%p341_p3)  ;;  %p1349_p8 = scmp.ne.s32.totalorder (!%p341_p3), %s1555_s27, 0 }
   0xf   : > { %s2398_s12 = smov (!%p400_p5, %s1341_s12), 31  ;;  %s2400_s13 = smov (!%p406_p6, %s1343_s13), 31 }
  0x10   : > { %s1342_s14 = sshll.u32 %s2398_s12, 2  ;;  %s1344_s18 = sshll.u32 %s2400_s13, 2 }
  0x11   : > { %s1346_s22 = sshll.u32 %s2400_s13, 3  ;;  %s2358_s3 = sld [smem:[#allocation9_spill]] }
  0x12   : > { %s1668_s23 = scalar_select %p411_p7, %s1559_s28, 1 }
  0x13   : > { %s1660_s17 = scalar_lea.vmem %s2356_s0, %s1342_s14  ;;  %s1678_s15 = scalar_lea.vmem %s2345_s5, %s1346_s22 }
  0x14   : > { %s1665_s21 = scalar_lea.vmem %s2357_s1, %s1344_s18  ;;  %s413_s13 = scalar_lea.vmem %s2342_s2, %s1668_s23 }
  0x15   : > { %s422_s24 = scalar_lea.vmem %s2344_s4, %s1668_s23  ;;  %s431_s1 = scalar_lea.vmem %s2346_s6, %s1668_s23 }
  0x16   : > { %s434_s10 = scalar_lea.vmem %s2347_s7, %s1668_s23  ;;  %442 = sbr.rel (%p1349_p8) target bundleno = 29 (0x1d), region = 56 }
  0x17   : > { %s1673_s26 = scalar_lea.vmem %s2358_s3, %s1346_s22  ;;  %s437_s22 = scalar_lea.vmem %s2348_s8, %s1668_s23 }
  0x1b   : > { %v1573_v0 = vmov 0.0  }
  0x1c   : > { %443 = vst [vmem:[#allocation2] sm:$0x1] %v1573_v0  ;;  %444 = vst [vmem:[#allocation3] sm:$0x1] %v1573_v0 }
  0x1d PF: > { %v1481_v1 = vld [vmem:[%s1660_s17 + $0x38] sm:$0xff]   ;;  %v1482_v2 = vld [vmem:[%s1660_s17 + $0x30] sm:$0xff]   ;;  %v1574_v3 = vmov 0   ;;  %v1483_v4 = vld [vmem:[%s1660_s17 + $0x28] sm:$0xff]   ;;  %s1368_s30 = sshll.u32 %s1555_s27, 7  ;;  %s1369_s11 = sshll.u32 %s1559_s28, 7 }
  0x1e   : > { %1479 = vset.pattern.permute.xlu0 %v1574_v3  ;;  %1480 = vset.pattern.permute.xlu1 %v1574_v3  ;;  %v1489_v5 = vld [vmem:[%s1665_s21] sm:$0xff]   ;;  %v673_v8 = vld [vmem:[%s1673_s26 + $0x10] sm:$0xff]  ;;  %v672_v9 = vld [vmem:[%s1673_s26 + $0x8] sm:$0xff]  ;;  %p1370_p9 = scmp.ne.s32.totalorder %s1555_s27, 1 }
  0x1f   : > { %1389 = vmatprep.subr.bf16.mxu0 %v1481_v1  ;;  %1421 = vmatprep.subr.bf16.mxu1 %v1481_v1  ;;  %v1490_v6 = vld [vmem:[%s1665_s21 + $0x20] sm:$0xff]   ;;  %v674_v11 = vld [vmem:[%s1673_s26 + $0x18] sm:$0xff]  ;;  %v676_v13 = vld [vmem:[%s1673_s26 + $0x28] sm:$0xff] }
  0x20   : > { %1390 = vmatpush3.bf16.xpose.msra.mxu0 %v1481_v1  ;;  %1429 = vmatpush3.bf16.xpose.msra.mxu1 %v1481_v1  ;;  %v671_v7 = vld [vmem:[%s1673_s26] sm:$0xff]  ;;  %v677_v14 = vld [vmem:[%s1673_s26 + $0x30] sm:$0xff]  ;;  %v678_v15 = vld [vmem:[%s1673_s26 + $0x38] sm:$0xff] }
  0x21   : > { %1391 = vmatprep.subr.bf16.mxu0 %v1482_v2  ;;  %1422 = vmatprep.subr.bf16.mxu1 %v1482_v2  ;;  %v1484_v10 = vld [vmem:[%s1660_s17 + $0x20] sm:$0xff]   ;;  %v1485_v16 = vld [vmem:[%s1660_s17 + $0x18] sm:$0xff]   ;;  %v680_v18 = vld [vmem:[%s1673_s26 + $0x48] sm:$0xff] }
  0x22   : > { %1405 = vmatprep.mubr.bf16.mxu0 %v1489_v5  ;;  %1413 = vmatprep.mubr.bf16.mxu1 %v1490_v6  ;;  %v675_v12 = vld [vmem:[%s1673_s26 + $0x20] sm:$0xff]  ;;  %v681_v19 = vld [vmem:[%s1673_s26 + $0x50] sm:$0xff]  ;;  %v682_v20 = vld [vmem:[%s1673_s26 + $0x58] sm:$0xff]  ;;  %v1035_v5 = vlaneseq }
  0x23   : > { %695 = vperm.xlu0 %1479, %v671_v7   ;;  %705 = vperm.xlu1 %1480, %v673_v8   ;;  %v679_v17 = vld [vmem:[%s1673_s26 + $0x40] sm:$0xff]  ;;  %v1486_v21 = vld [vmem:[%s1660_s17 + $0x10] sm:$0xff]   ;;  %v950_v24 = vld [vmem:[%s1678_s15 + $0x8] sm:$0xff] }
  0x24   : > { %v683_v22 = vld [vmem:[%s1673_s26 + $0x60] sm:$0xff]  ;;  %v684_v25 = vld [vmem:[%s1673_s26 + $0x68] sm:$0xff]  ;;  %v951_v27 = vld [vmem:[%s1678_s15 + $0x10] sm:$0xff] }
  0x25   : > { %v949_v23 = vld [vmem:[%s1678_s15] sm:$0xff]  ;;  %v1487_v26 = vld [vmem:[%s1660_s17 + $0x8] sm:$0xff]   ;;  %v685_v28 = vld [vmem:[%s1673_s26 + $0x70] sm:$0xff] }
  0x26   : > { %v952_v29 = vld [vmem:[%s1678_s15 + $0x18] sm:$0xff]  ;;  %v1488_v31 = vld [vmem:[%s1660_s17] sm:$0xff]   ;;  %v954_v33 = vld [vmem:[%s1678_s15 + $0x28] sm:$0xff] }
  0x27   : > { %700 = vperm.xlu0 %1479, %v672_v9   ;;  %710 = vperm.xlu1 %1480, %v674_v11   ;;  %v686_v30 = vld [vmem:[%s1673_s26 + $0x78] sm:$0xff]  ;;  %v953_v32 = vld [vmem:[%s1678_s15 + $0x20] sm:$0xff]  ;;  %v955_v34 = vld [vmem:[%s1678_s15 + $0x30] sm:$0xff] }
  0x28   : > { %1392 = vmatpush3.bf16.xpose.msra.mxu0 %v1482_v2  ;;  %1430 = vmatpush3.bf16.xpose.msra.mxu1 %v1482_v2  ;;  %v956_v35 = vld [vmem:[%s1678_s15 + $0x38] sm:$0xff]  ;;  %v957_v36 = vld [vmem:[%s1678_s15 + $0x40] sm:$0xff]  ;;  %v958_v37 = vld [vmem:[%s1678_s15 + $0x48] sm:$0xff] }
  0x29   : > { %1393 = vmatprep.subr.bf16.mxu0 %v1483_v4  ;;  %1423 = vmatprep.subr.bf16.mxu1 %v1483_v4  ;;  %v1491_v38 = vld [vmem:[%s1665_s21 + $0x8] sm:$0xff]   ;;  %v959_v40 = vld [vmem:[%s1678_s15 + $0x50] sm:$0xff]  ;;  %v960_v43 = vld [vmem:[%s1678_s15 + $0x58] sm:$0xff] }
  0x2a   : > { %v1492_v39 = vld [vmem:[%s1665_s21 + $0x28] sm:$0xff]   ;;  %v1493_v41 = vld [vmem:[%s1665_s21 + $0x10] sm:$0xff]   ;;  %v961_v44 = vld [vmem:[%s1678_s15 + $0x60] sm:$0xff] }
  0x2b   : > { %715 = vperm.xlu0 %1479, %v675_v12   ;;  %720 = vperm.xlu1 %1480, %v676_v13   ;;  %v1494_v42 = vld [vmem:[%s1665_s21 + $0x30] sm:$0xff]   ;;  %v962_v45 = vld [vmem:[%s1678_s15 + $0x68] sm:$0xff]  ;;  %v1495_v46 = vld [vmem:[%s1665_s21 + $0x18] sm:$0xff]  }
  0x2c   : > { %v1496_v47 = vld [vmem:[%s1665_s21 + $0x38] sm:$0xff]   ;;  %v963_v48 = vld [vmem:[%s1678_s15 + $0x70] sm:$0xff]  ;;  %v1766_v1 = vld [vmem:[%s413_s13] ss:$0 sm:$0xff] }
  0x2d   : > { %v964_v49 = vld [vmem:[%s1678_s15 + $0x78] sm:$0xff] }
  0x2f   : > { %725 = vperm.xlu0 %1479, %v677_v14   ;;  %730 = vperm.xlu1 %1480, %v678_v15   ;;  %v1036_v14 = vshrl.u32 %v1035_v5, 7 }
  0x30   : > { %1394 = vmatpush3.bf16.xpose.msra.mxu0 %v1483_v4  ;;  %1431 = vmatpush3.bf16.xpose.msra.mxu1 %v1483_v4 }
  0x31   : > { %1395 = vmatprep.subr.bf16.mxu0 %v1484_v10  ;;  %1424 = vmatprep.subr.bf16.mxu1 %v1484_v10 }
  0x33   : > { %735 = vperm.xlu0 %1479, %v679_v17   ;;  %740 = vperm.xlu1 %1480, %v680_v18  }
  0x37   : > { %745 = vperm.xlu0 %1479, %v681_v19   ;;  %750 = vperm.xlu1 %1480, %v682_v20   ;;  %v1781_v20 = vstv %s1368_s30 }
  0x38   : > { %1396 = vmatpush3.bf16.xpose.msra.mxu0 %v1484_v10  ;;  %1432 = vmatpush3.bf16.xpose.msra.mxu1 %v1484_v10 }
  0x39   : > { %1397 = vmatprep.subr.bf16.mxu0 %v1485_v16  ;;  %1425 = vmatprep.subr.bf16.mxu1 %v1485_v16 }
  0x3b   : > { %755 = vperm.xlu0 %1479, %v683_v22   ;;  %967 = vperm.xlu1 %1480, %v949_v23  }
  0x3f   : > { %970 = vperm.xlu0 %1479, %v950_v24   ;;  %760 = vperm.xlu1 %1480, %v684_v25   ;;  %v1071_v25 = vand.u32 127, %v1035_v5 }
  0x40   : > { %1398 = vmatpush3.bf16.xpose.msra.mxu0 %v1485_v16  ;;  %1433 = vmatpush3.bf16.xpose.msra.mxu1 %v1485_v16 }
  0x41   : > { %1399 = vmatprep.subr.bf16.mxu0 %v1486_v21  ;;  %1426 = vmatprep.subr.bf16.mxu1 %v1486_v21 }
  0x43   : > { %973 = vperm.xlu0 %1479, %v951_v27   ;;  %765 = vperm.xlu1 %1480, %v685_v28   ;;  %v1037_v27 = vadd.s32 8, %v1036_v14 }
  0x47   : > { %976 = vperm.xlu0 %1479, %v952_v29   ;;  %770 = vperm.xlu1 %1480, %v686_v30   ;;  %v1038_v30 = vadd.s32 16, %v1036_v14 }
  0x48   : > { %1400 = vmatpush3.bf16.xpose.msra.mxu0 %v1486_v21  ;;  %1434 = vmatpush3.bf16.xpose.msra.mxu1 %v1486_v21 }
  0x49   : > { %1401 = vmatprep.subr.bf16.mxu0 %v1487_v26  ;;  %1427 = vmatprep.subr.bf16.mxu1 %v1487_v26 }
  0x4b   : > { %979 = vperm.xlu0 %1479, %v953_v32   ;;  %982 = vperm.xlu1 %1480, %v954_v33   ;;  %v1040_v32 = vadd.s32 32, %v1036_v14 }
  0x4f   : > { %985 = vperm.xlu0 %1479, %v955_v34   ;;  %988 = vperm.xlu1 %1480, %v956_v35   ;;  %v1041_v35 = vadd.s32 40, %v1036_v14 }
  0x50   : > { %1402 = vmatpush3.bf16.xpose.msra.mxu0 %v1487_v26  ;;  %1435 = vmatpush3.bf16.xpose.msra.mxu1 %v1487_v26  ;;  %v1072_v26 = vstv %s1369_s11 }
  0x51   : > { %1403 = vmatprep.subr.bf16.mxu0 %v1488_v31  ;;  %1428 = vmatprep.subr.bf16.mxu1 %v1488_v31 }
  0x53   : > { %991 = vperm.xlu0 %1479, %v957_v36   ;;  %994 = vperm.xlu1 %1480, %v958_v37   ;;  %v1042_v36 = vadd.s32 48, %v1036_v14 }
  0x57   : > { %997 = vperm.xlu0 %1479, %v959_v40   ;;  %1000 = vperm.xlu1 %1480, %v960_v43   ;;  %v1802_v40 = vadd.s32 %v1781_v20, %v1037_v27 }
  0x58   : > { %1404 = vmatpush3.bf16.xpose.msra.mxu0 %v1488_v31  ;;  %1436 = vmatpush3.bf16.xpose.msra.mxu1 %v1488_v31  ;;  %v1039_v31 = vadd.s32 24, %v1036_v14 }
  0x5b   : > { %1003 = vperm.xlu0 %1479, %v961_v44   ;;  %1006 = vperm.xlu1 %1480, %v962_v45   ;;  %v1808_v45 = vadd.s32 %v1781_v20, %v1038_v30 }
  0x5f   : > { %1406 = vmatmul.mubr.bf16.vlgmr.msra.gmra.mxu0 %v1491_v38  ;;  %1414 = vmatmul.mubr.bf16.vlgmr.msra.gmra.mxu1 %v1492_v39  ;;  %v1797_v38 = vadd.s32 %v1781_v20, %v1036_v14  ;;  %v1799_v39 = vadd.s32 %v1072_v26, %v1071_v25 }
  0x60   : > { %1409 = vmatprep.mubr.bf16.mxu0 %v1493_v41  ;;  %1417 = vmatprep.mubr.bf16.mxu1 %v1494_v42  ;;  %v1043_v41 = vadd.s32 56, %v1036_v14 }
  0x61   : > { %1009 = vperm.xlu0 %1479, %v963_v48   ;;  %1012 = vperm.xlu1 %1480, %v964_v49   ;;  %v1044_v49 = vadd.s32 64, %v1036_v14  ;;  %vm1075_vm0 = vcmp.ne.s32.totalorder %v1802_v40, %v1799_v39  ;;  %vm1074_vm1 = vcmp.ne.s32.totalorder %v1797_v38, %v1799_v39  ;;  %vm1076_vm6 = vcmp.ne.s32.totalorder %v1808_v45, %v1799_v39 }
  0x67   : > { %1410 = vmatmul.mubr.bf16.gmra.mxu0 %v1495_v46  ;;  %1418 = vmatmul.mubr.bf16.gmra.mxu1 %v1496_v47  ;;  %v1811_v46 = vadd.s32 %v1781_v20, %v1039_v31  ;;  %v1814_v47 = vadd.s32 %v1781_v20, %v1040_v32 }
  0x69   : > { %vm1077_vm11 = vcmp.ne.s32.totalorder %v1811_v46, %v1799_v39 }
  0x9e   : > { %v696_v50 = vpop.permute.xlu0 %695  ;;  %v706_v51 = vpop.permute.xlu1 %705 }
  0x9f   : > { %v773_v7 = vadd.f32 %v1766_v1, %v696_v50  ;;  %v775_v13 = vadd.f32 %v1766_v1, %v706_v51  ;;  %v1045_v50 = vadd.s32 72, %v1036_v14 }
  0xa2   : > { %v701_v52 = vpop.permute.xlu0 %700  ;;  %v711_v53 = vpop.permute.xlu1 %710 }
  0xa3   : > { %v774_v4 = vadd.f32 %v1766_v1, %v701_v52  ;;  %v776_v24 = vadd.f32 %v1766_v1, %v711_v53  ;;  %v1822_v52 = vadd.s32 %v1781_v20, %v1041_v35  ;;  %v1825_v53 = vadd.s32 %v1781_v20, %v1042_v36 }
  0xa6   : > { %v716_v54 = vpop.permute.xlu0 %715  ;;  %v1749_v55 = vpop.permute.xlu1 %720 }
  0xa7   : > { %v777_v43 = vadd.f32 %v1766_v1, %v716_v54  ;;  %v1865_v36 = vadd.f32 %v1766_v1, %v1749_v55 }
  0xaa   : > { %v1751_v56 = vpop.permute.xlu0 %725  ;;  %v1753_v57 = vpop.permute.xlu1 %730 }
  0xab   : > { %v780_v30 = vadd.f32 %v1766_v1, %v1753_v57 }
  0xae   : > { %v1755_v58 = vpop.permute.xlu0 %735  ;;  %v1757_v62 = vpop.permute.xlu1 %740 }
  0xb2   : > { %v1759_v63 = vpop.permute.xlu0 %745  ;;  %v1770_v8 = vpop.permute.xlu1 %750 }
  0xb3   : > { %v783_v5 = vadd.f32 %v1766_v1, %v1759_v63 }
  0xb6   : > { %v1772_v9 = vpop.permute.xlu0 %755  ;;  %v1783_v21 = vpop.permute.xlu1 %967 }
  0xba   : > { %v1785_v22 = vpop.permute.xlu0 %970  ;;  %v1805_v44 = vpop.permute.xlu1 %760 }
  0xbe   : > { %v1816_v48 = vpop.permute.xlu0 %973 }
  0xc2   : > { %v1843_v26 = vpop.permute.xlu0 %976 }
 0x11f   : > { %v1407_v59 = vpop.f32.mrf.mxu0  ;;  %v1415_v6 = vpop.f32.mrf.mxu1 }
 0x120   : > { %v791_v10 = vmul.f32 2.0, %v1407_v59  ;;  %v799_v54 = vmul.f32 2.0, %v1415_v6  ;;  %v1836_v6 = vadd.s32 %v1781_v20, %v1045_v50 }
 0x121   : > { %v607_v60 = vpop.f32.mrf.mxu0  ;;  %v1776_v15 = vpop.f32.mrf.mxu1 }
 0x122   : > { %v789_v2 = vmul.f32 2.0, %v607_v60  ;;  %v807_v17 = vsub.f32 %v775_v13, %v791_v10  ;;  %v1828_v60 = vadd.s32 %v1781_v20, %v1043_v41  ;;  %v1050_v10 = vadd.s32 112, %v1036_v14 }
 0x123   : > { %v1408_v61 = vpop.f32.mrf.mxu0  ;;  %v1790_v28 = vpop.f32.mrf.mxu1  ;;  %v1051_v13 = vadd.s32 120, %v1036_v14 }
 0x124   : > { %v805_v12 = vsub.f32 %v773_v7, %v789_v2  ;;  %v792_v18 = vmul.f32 2.0, %v1408_v61  ;;  %v1793_v33 = vmax.f32 %v807_v17, 0.0  ;;  %v1046_v61 = vadd.s32 80, %v1036_v14 }
 0x125   : > { %v610_v0 = vpop.f32.mrf.mxu0  ;;  %v642_v42 = vpop.f32.mrf.mxu1  ;;  %v1048_v2 = vadd.s32 96, %v1036_v14  ;;  %v1049_v7 = vadd.s32 104, %v1036_v14  ;;  %v779_v17 = vadd.f32 %v1766_v1, %v1751_v56  ;;  %v1861_v32 = vadd.s32 %v1781_v20, %v1050_v10 }
 0x126   : > { %v790_v3 = vmul.f32 2.0, %v610_v0  ;;  %v1787_v23 = vmax.f32 %v805_v12, 0.0  ;;  %v808_v34 = vsub.f32 %v776_v24, %v792_v18  ;;  %v1047_v0 = vadd.s32 88, %v1036_v14  ;;  %v766_v18 = vpop.permute.xlu1 %765 }
 0x127   : > { %v1411_v16 = vpop.f32.mrf.mxu0  ;;  %v1833_v12 = vadd.s32 %v1781_v20, %v1044_v49  ;;  %v815_v24 = vsub.f32 %v783_v5, %v799_v54  ;;  %v1852_v14 = vadd.s32 %v1781_v20, %v1048_v2  ;;  %v1858_v31 = vadd.s32 %v1781_v20, %v1049_v7  ;;  %v1879_v49 = vld [vmem:[%s422_s24] ss:$0 sm:$0xff] }
 0x128   : > { %v806_v11 = vsub.f32 %v774_v4, %v790_v3  ;;  %v1819_v51 = vmax.f32 %v808_v34, 0.0  ;;  %v1419_v3 = vpop.f32.mrf.mxu1  ;;  %v1849_v27 = vadd.s32 %v1781_v20, %v1047_v0  ;;  %v798_v41 = vmul.f32 2.0, %v642_v42 }
 0x129   : > { %v623_v29 = vpop.f32.mrf.mxu0  ;;  %v1883_v55 = vmax.f32 %v815_v24, 0.0  ;;  %v784_v42 = vadd.f32 %v1766_v1, %v1770_v8  ;;  %v800_v54 = vmul.f32 2.0, %v1790_v28  ;;  %vm1018_vm2 = vcmp.eq.s32.totalorder %v1783_v21, %v1879_v49 }
 0x12a   : > { %v1779_v19 = vmax.f32 %v806_v11, 0.0  ;;  %v793_v37 = vmul.f32 2.0, %v623_v29  ;;  %v795_v11 = vmul.f32 2.0, %v1411_v16  ;;  %v1846_v16 = vadd.s32 %v1781_v20, %v1046_v61  ;;  %v655_v56 = vpop.f32.mrf.mxu1  ;;  %v771_v28 = vpop.permute.xlu1 %770  ;;  %vm1091_vm14 = vmand %vm1018_vm2, %vm1074_vm1 }
 0x12b   : > { %v1412_v4 = vpop.f32.mrf.mxu0  ;;  %v797_v29 = vmul.f32 2.0, %v1776_v15  ;;  %v1870_v15 = vadd.s32 %v1781_v20, %v1051_v13  ;;  %vm1019_vm3 = vcmp.eq.s32.totalorder %v1785_v22, %v1879_v49  ;;  %v1904_v8 = vadd.f32 %v1766_v1, %v1805_v44 }
 0x12c   : > { %1497 = vrsqrt.f32 %v1779_v19  ;;  %v809_v59 = vsub.f32 %v777_v43, %v793_v37  ;;  %v796_v63 = vmul.f32 2.0, %v1412_v4  ;;  %v811_v34 = vsub.f32 %v779_v17, %v795_v11  ;;  %v1909_v4 = vpop.permute.xlu0 %979  ;;  %vm1958_vm13 = vmand %vm1019_vm3, %vm1075_vm0 }
 0x12d   : > { %1499 = vrsqrt.f32 %v1787_v23  ;;  %v781_v37 = vadd.f32 %v1766_v1, %v1755_v58  ;;  %v626_v57 = vpop.f32.mrf.mxu0  ;;  %v782_v43 = vadd.f32 %v1766_v1, %v1757_v62  ;;  %v1890_v62 = vadd.f32 %v1766_v1, %v1772_v9 }
 0x12e   : > { %1501 = vrsqrt.f32 %v1793_v33  ;;  %v1841_v25 = vmax.f32 %v809_v59, 0.0  ;;  %v812_v58 = vsub.f32 %v780_v30, %v796_v63  ;;  %v1420_v59 = vpop.f32.mrf.mxu1  ;;  %v1898_v0 = vmax.f32 %v811_v34, 0.0 }
 0x12f   : > { %1503 = vrsqrt.f32 %v1819_v51  ;;  %v813_v50 = vsub.f32 %v781_v37, %v797_v29  ;;  %v794_v2 = vmul.f32 2.0, %v626_v57  ;;  %v1907_v9 = vadd.f32 %v1766_v1, %v766_v18  ;;  %v1936_v57 = vpop.permute.xlu1 %982 }
 0x130   : > { %1505 = vrsqrt.f32 %v1841_v25  ;;  %v814_v5 = vsub.f32 %v782_v43, %v798_v41  ;;  %vm853_vm4 = vcmp.eq.f32.partialorder %v1793_v33, inf  ;;  %v1914_v11 = vmax.f32 %v812_v58, 0.0  ;;  %v658_v18 = vpop.f32.mrf.mxu1 }
 0x131   : > { %1507 = vrsqrt.f32 %v1883_v55  ;;  %v1916_v13 = vmax.f32 %v813_v50, 0.0  ;;  %v816_v44 = vsub.f32 %v784_v42, %v800_v54  ;;  %vm846_vm5 = vcmp.eq.f32.partialorder %v1779_v19, inf }
 0x132   : > { %v1919_v17 = vmul.f32 2.0, %v1419_v3  ;;  %vm1020_vm7 = vcmp.eq.s32.totalorder %v1816_v48, %v1879_v49  ;;  %1509 = vrsqrt.f32 %v1898_v0  ;;  %v801_v63 = vmul.f32 2.0, %v655_v56  ;;  %v1938_v56 = vpop.permute.xlu0 %985 }
 0x133   : > { %v810_v29 = vsub.f32 %v1865_v36, %v794_v2  ;;  %vm839_vm8 = vcmp.eq.f32.partialorder %v1787_v23, inf  ;;  %v849_v3 = vand.u32 2147483648, %v1779_v19  ;;  %v1931_v34 = vmax.f32 %v814_v5, 0.0 }
 0x134   : > { %vm848_vm9 = vcmp.eq.f32.partialorder %v1779_v19, 0.0  ;;  %1511 = vrsqrt.f32 %v1914_v11  ;;  %v802_v41 = vmul.f32 2.0, %v658_v18  ;;  %vm841_vm10 = vcmp.eq.f32.partialorder %v1787_v23, 0.0 }
 0x135   : > { %v842_v36 = vand.u32 2147483648, %v1787_v23  ;;  %1513 = vrsqrt.f32 %v1916_v13  ;;  %vm1021_vm12 = vcmp.eq.s32.totalorder %v1843_v26, %v1879_v49  ;;  %v817_v58 = vsub.f32 %v1890_v62, %v801_v63 }
 0x136   : > { %v1950_v42 = vmax.f32 %v810_v29, 0.0  ;;  %1515 = vrsqrt.f32 %v1931_v34  ;;  %v788_v5 = vadd.f32 %v1766_v1, %v771_v28  ;;  %vm855_vm15 = vcmp.eq.f32.partialorder %v1793_v33, 0.0  ;;  %v1995_v28 = vpop.permute.xlu1 %988 }
 0x137   : > { %v819_v40 = vsub.f32 %v1907_v9, %v1919_v17  ;;  %vm1022_vm3 = vcmp.eq.s32.totalorder %v1909_v4, %v1879_v49  ;;  %vm860_vm2 = vcmp.eq.f32.partialorder %v1819_v51, inf  ;;  %v1993_v1 = vmax.f32 %v817_v58, 0.0 }
 0x138   : > { %1517 = vrsqrt.f32 %v1950_v42  ;;  %v912_v29 = vand.u32 2147483648, %v1883_v55  ;;  %v898_v58 = vand.u32 2147483648, %v1916_v13 }
 0x139   : > { %v1498_v35 = vpop.eup %1497 }
 0x13a   : > { %v1500_v20 = vpop.eup %1499  ;;  %v845_v61 = vmul.f32 %v1498_v35, %v1779_v19 }
 0x13b   : > { %v1502_v7 = vpop.eup %1501  ;;  %v838_v10 = vmul.f32 %v1500_v20, %v1787_v23  ;;  %v804_v20 = vmul.f32 2.0, %v1420_v59 }
 0x13c   : > { %v847_v24 = vsel %vm846_vm5, %v1779_v19, %v845_v61  ;;  %v852_v30 = vmul.f32 %v1502_v7, %v1793_v33  ;;  %v1504_v35 = vpop.eup %1503  ;;  %v1947_v19 = vmax.f32 %v816_v44, 0.0  ;;  %v818_v61 = vsub.f32 %v1904_v8, %v802_v41 }
 0x13d   : > { %v840_v37 = vsel %vm839_vm8, %v1787_v23, %v838_v10  ;;  %v850_v43 = vsel %vm848_vm9, %v849_v3, %v847_v24  ;;  %v859_v62 = vmul.f32 %v1504_v35, %v1819_v51  ;;  %v1506_v2 = vpop.eup %1505  ;;  %v856_v7 = vand.u32 2147483648, %v1793_v33 }
 0x13e   : > { %v854_v50 = vsel %vm853_vm4, %v1793_v33, %v852_v30  ;;  %v843_v54 = vsel %vm841_vm10, %v842_v36, %v840_v37  ;;  %v1108_v59 = vsel %vm1958_vm13, %v850_v43, 0.0  ;;  %v1148_v22 = vsel %vm1075_vm0, %v850_v43, 0.0  ;;  %v1997_v33 = vpop.permute.xlu0 %991  ;;  %v1508_v63 = vpop.eup %1507 }
 0x13f   : > { %vm1078_vm0 = vcmp.ne.s32.totalorder %v1814_v47, %v1799_v39  ;;  %v1107_v8 = vsel %vm1091_vm14, %v843_v54, 0.0  ;;  %v1147_v21 = vsel %vm1074_vm1, %v843_v54, 0.0  ;;  %v857_v9 = vsel %vm855_vm15, %v856_v7, %v854_v50  ;;  %vm1093_vm1 = vmand %vm1020_vm7, %vm1076_vm6  ;;  %v1510_v37 = vpop.eup %1509  ;;  %v2044_v50 = vpop.permute.xlu1 %994 }
 0x140   : > { %1519 = vrsqrt.f32 %v1947_v19  ;;  %v1123_v10 = vadd.f32 %v1108_v59, %v1107_v8  ;;  %v1163_v44 = vadd.f32 %v1148_v22, %v1147_v21  ;;  %v861_v17 = vsel %vm860_vm2, %v1819_v51, %v859_v62 }
 0x141   : > { %v866_v18 = vmul.f32 %v1506_v2, %v1841_v25  ;;  %v820_v24 = vsub.f32 %v788_v5, %v804_v20  ;;  %v2002_v38 = vmax.f32 %v818_v61, 0.0  ;;  %vm909_vm4 = vcmp.eq.f32.partialorder %v1883_v55, inf }
 0x142   : > { %v863_v30 = vand.u32 2147483648, %v1819_v51  ;;  %v2013_v3 = vmax.f32 %v819_v40, 0.0  ;;  %vm1079_vm5 = vcmp.ne.s32.totalorder %v1822_v52, %v1799_v39  ;;  %vm1023_vm8 = vcmp.eq.s32.totalorder %v1936_v57, %v1879_v49  ;;  %v2046_v54 = vpop.permute.xlu0 %997 }
 0x143   : > { %v1109_v35 = vsel %vm1093_vm1, %v857_v9, 0.0  ;;  %v1149_v48 = vsel %vm1076_vm6, %v857_v9, 0.0  ;;  %vm862_vm7 = vcmp.eq.f32.partialorder %v1819_v51, 0.0  ;;  %1521 = vrsqrt.f32 %v1993_v1  ;;  %v1512_v51 = vpop.eup %1511  ;;  %vm2040_vm6 = vmand %vm1021_vm12, %vm1077_vm11 }
 0x144   : > { %v864_v41 = vsel %vm862_vm7, %v863_v30, %v861_v17  ;;  %v1124_v36 = vadd.f32 %v1123_v10, %v1109_v35  ;;  %v1164_v43 = vadd.f32 %v1163_v44, %v1149_v48  ;;  %vm867_vm9 = vcmp.eq.f32.partialorder %v1841_v25, inf  ;;  %v1514_v61 = vpop.eup %1513 }
 0x145   : > { %vm1080_vm10 = vcmp.ne.s32.totalorder %v1825_v53, %v1799_v39  ;;  %vm1024_vm13 = vcmp.eq.s32.totalorder %v1938_v56, %v1879_v49  ;;  %v868_v45 = vsel %vm867_vm9, %v1841_v25, %v866_v18  ;;  %v2031_v20 = vmax.f32 %v820_v24, 0.0  ;;  %v1516_v21 = vpop.eup %1515 }
 0x146   : > { %1523 = vrsqrt.f32 %v2002_v38  ;;  %v908_v62 = vmul.f32 %v1508_v63, %v1883_v55  ;;  %vm895_vm14 = vcmp.eq.f32.partialorder %v1916_v13, inf  ;;  %v919_v59 = vand.u32 2147483648, %v1947_v19  ;;  %v2101_v63 = vpop.permute.xlu1 %1000  ;;  %v2103_v30 = vpop.permute.xlu0 %1003 }
 0x147   : > { %1525 = vrsqrt.f32 %v2013_v3  ;;  %v870_v22 = vand.u32 2147483648, %v1841_v25  ;;  %v1110_v26 = vsel %vm2040_vm6, %v864_v41, 0.0  ;;  %v1150_v2 = vsel %vm1077_vm11, %v864_v41, 0.0 }
 0x148   : > { %v880_v5 = vmul.f32 %v1510_v37, %v1898_v0  ;;  %vm869_vm1 = vcmp.eq.f32.partialorder %v1841_v25, 0.0  ;;  %vm902_vm15 = vcmp.eq.f32.partialorder %v1931_v34, inf  ;;  %v1125_v40 = vadd.f32 %v1124_v36, %v1110_v26  ;;  %v1518_v25 = vpop.eup %1517 }
 0x149   : > { %v871_v7 = vsel %vm869_vm1, %v870_v22, %v868_v45  ;;  %v1165_v8 = vadd.f32 %v1164_v43, %v1150_v2  ;;  %vm881_vm2 = vcmp.eq.f32.partialorder %v1898_v0, inf  ;;  %vm883_vm7 = vcmp.eq.f32.partialorder %v1898_v0, 0.0  ;;  %vm1095_vm1 = vmand %vm1022_vm3, %vm1078_vm0 }
 0x14a   : > { %v887_v46 = vmul.f32 %v1512_v51, %v1914_v11  ;;  %1527 = vrsqrt.f32 %v2031_v20  ;;  %v910_v9 = vsel %vm909_vm4, %v1883_v55, %v908_v62  ;;  %v894_v10 = vmul.f32 %v1514_v61, %v1916_v13 }
 0x14b   : > { %v884_v44 = vand.u32 2147483648, %v1898_v0  ;;  %vm888_vm11 = vcmp.eq.f32.partialorder %v1914_v11, inf  ;;  %vm1083_vm6 = vcmp.ne.s32.totalorder %v1836_v6, %v1799_v39  ;;  %vm1027_vm9 = vcmp.eq.s32.totalorder %v2044_v50, %v1879_v49 }
 0x14c   : > { %vm904_vm12 = vcmp.eq.f32.partialorder %v1931_v34, 0.0  ;;  %v882_v4 = vsel %vm881_vm2, %v1898_v0, %v880_v5  ;;  %v1111_v17 = vsel %vm1095_vm1, %v871_v7, 0.0  ;;  %v1151_v18 = vsel %vm1078_vm0, %v871_v7, 0.0  ;;  %vm2120_vm2 = vmand %vm1023_vm8, %vm1079_vm5 }
 0x14d   : > { %v873_v24 = vmul.f32 %v1518_v25, %v1950_v42  ;;  %vm916_vm3 = vcmp.eq.f32.partialorder %v1947_v19, inf  ;;  %v1126_v35 = vadd.f32 %v1125_v40, %v1111_v17  ;;  %v1166_v48 = vadd.f32 %v1165_v8, %v1151_v18  ;;  %v1520_v41 = vpop.eup %1519 }
 0x14e   : > { %vm874_vm4 = vcmp.eq.f32.partialorder %v1950_v42, inf  ;;  %v877_v37 = vand.u32 2147483648, %v1950_v42  ;;  %v901_v36 = vmul.f32 %v1516_v21, %v1931_v34  ;;  %v889_v47 = vsel %vm888_vm11, %v1914_v11, %v887_v46  ;;  %v2179_v21 = vpop.permute.xlu1 %1006  ;;  %v2181_v46 = vpop.permute.xlu0 %1009 }
 0x14f   : > { %v875_v43 = vsel %vm874_vm4, %v1950_v42, %v873_v24  ;;  %vm876_vm0 = vcmp.eq.f32.partialorder %v1950_v42, 0.0  ;;  %v905_v51 = vand.u32 2147483648, %v1931_v34  ;;  %v885_v23 = vsel %vm883_vm7, %v884_v44, %v882_v4  ;;  %vm2148_vm7 = vmand %vm1024_vm13, %vm1080_vm10 }
 0x150   : > { %v891_v62 = vand.u32 2147483648, %v1914_v11  ;;  %v878_v22 = vsel %vm876_vm0, %v877_v37, %v875_v43  ;;  %vm1085_vm11 = vcmp.ne.s32.totalorder %v1849_v27, %v1799_v39  ;;  %vm1029_vm1 = vcmp.eq.s32.totalorder %v2101_v63, %v1879_v49  ;;  %v1522_v61 = vpop.eup %1521 }
 0x151   : > { %v896_v57 = vsel %vm895_vm14, %v1916_v13, %v894_v10  ;;  %vm918_vm8 = vcmp.eq.f32.partialorder %v1947_v19, 0.0  ;;  %vm890_vm4 = vcmp.eq.f32.partialorder %v1914_v11, 0.0  ;;  %v1112_v0 = vsel %vm2120_vm2, %v878_v22, 0.0 }
 0x152   : > { %v1152_v42 = vsel %vm1079_vm5, %v878_v22, 0.0  ;;  %vm2367_vm14 = vcmp.eq.f32.partialorder %v1883_v55, 0.0  ;;  %v892_v2 = vsel %vm890_vm4, %v891_v62, %v889_v47  ;;  %v1127_v5 = vadd.f32 %v1126_v35, %v1112_v0  ;;  %v1013_v63 = vpop.permute.xlu1 %1012 }
 0x153   : > { %v913_v11 = vsel %vm2367_vm14, %v912_v29, %v910_v9  ;;  %v1167_v52 = vadd.f32 %v1166_v48, %v1152_v42  ;;  %vm1086_vm5 = vcmp.ne.s32.totalorder %v1852_v14, %v1799_v39  ;;  %v915_v56 = vmul.f32 %v1520_v41, %v1947_v19  ;;  %v1524_v29 = vpop.eup %1523 }
 0x154   : > { %v903_v7 = vsel %vm902_vm15, %v1931_v34, %v901_v36  ;;  %v1113_v40 = vsel %vm2148_vm7, %v885_v23, 0.0  ;;  %v1153_v55 = vsel %vm1080_vm10, %v885_v23, 0.0  ;;  %vm2368_vm13 = vcmp.ne.s32.totalorder %v1828_v60, %v1799_v39  ;;  %v1526_v10 = vpop.eup %1525 }
 0x155   : > { %vm2369_vm2 = vcmp.eq.s32.totalorder %v1995_v28, %v1879_v49  ;;  %vm2372_vm15 = vcmp.eq.f32.partialorder %v1916_v13, 0.0  ;;  %vm937_vm10 = vcmp.eq.f32.partialorder %v2013_v3, inf  ;;  %v1128_v25 = vadd.f32 %v1127_v5, %v1113_v40 }
 0x156   : > { %vm2175_vm4 = vmand %vm2369_vm2, %vm2368_vm13  ;;  %v899_v53 = vsel %vm2372_vm15, %v898_v58, %v896_v57  ;;  %v1168_v9 = vadd.f32 %v1167_v52, %v1153_v55  ;;  %vm2373_vm7 = vcmp.ne.s32.totalorder %v1846_v16, %v1799_v39  ;;  %vm2374_vm14 = vcmp.eq.s32.totalorder %v2046_v54, %v1879_v49 }
 0x157   : > { %vm2194_vm13 = vmand %vm2374_vm14, %vm2373_vm7  ;;  %v940_v13 = vand.u32 2147483648, %v2013_v3  ;;  %v922_v58 = vmul.f32 %v1522_v61, %v1993_v1  ;;  %v1114_v44 = vsel %vm2175_vm4, %v892_v2, 0.0  ;;  %vm2377_vm0 = vcmp.ne.s32.totalorder %v1828_v60, %v1799_v39  ;;  %v1528_v48 = vpop.eup %1527 }
 0x158   : > { %v1154_v54 = vsel %vm2377_vm0, %v892_v2, 0.0  ;;  %vm2378_vm7 = vcmp.ne.s32.totalorder %v1833_v12, %v1799_v39  ;;  %vm2379_vm14 = vcmp.eq.s32.totalorder %v1997_v33, %v1879_v49  ;;  %v1117_v4 = vsel %vm2194_vm13, %v913_v11, 0.0 }
 0x159   : > { %vm1099_vm2 = vmand %vm2379_vm14, %vm2378_vm7  ;;  %v906_v17 = vsel %vm904_vm12, %v905_v51, %v903_v7  ;;  %v1129_v18 = vadd.f32 %v1128_v25, %v1114_v44  ;;  %v1169_v24 = vadd.f32 %v1168_v9, %v1154_v54  ;;  %vm1088_vm4 = vcmp.ne.s32.totalorder %v1861_v32, %v1799_v39 }
 0x15a   : > { %vm1032_vm0 = vcmp.eq.s32.totalorder %v2181_v46, %v1879_v49  ;;  %v1115_v60 = vsel %vm1099_vm2, %v899_v53, 0.0  ;;  %vm2380_vm15 = vmmov %vm2378_vm7  ;;  %v917_v35 = vsel %vm916_vm3, %v1947_v19, %v915_v56  ;;  %v929_v34 = vmul.f32 %v1524_v29, %v2002_v38 }
 0x15b   : > { %v1155_v33 = vsel %vm2380_vm15, %v899_v53, 0.0  ;;  %vm1100_vm12 = vmand %vm1027_vm9, %vm1083_vm6  ;;  %vm923_vm13 = vcmp.eq.f32.partialorder %v1993_v1, inf  ;;  %v926_v37 = vand.u32 2147483648, %v1993_v1  ;;  %v1130_v12 = vadd.f32 %v1129_v18, %v1115_v60  ;;  %v1146_v18 = vld [vmem:[#allocation3] sm:$0x1] }
 0x15c   : > { %v1170_v41 = vadd.f32 %v1169_v24, %v1155_v33  ;;  %vm1089_vm2 = vcmp.ne.s32.totalorder %v1870_v15, %v1799_v39  ;;  %v1116_v36 = vsel %vm1100_vm12, %v906_v17, 0.0  ;;  %v1156_v47 = vsel %vm1083_vm6, %v906_v17, 0.0  ;;  %vm1102_vm6 = vmand %vm1029_vm1, %vm1085_vm11  ;;  %v1090_v17 = vld [vmem:[#allocation2] sm:$0x1] }
 0x15d   : > { %v936_v43 = vmul.f32 %v1526_v10, %v2013_v3  ;;  %v924_v45 = vsel %vm923_vm13, %v1993_v1, %v922_v58  ;;  %v920_v50 = vsel %vm918_vm8, %v919_v59, %v917_v35  ;;  %vm930_vm9 = vcmp.eq.f32.partialorder %v2002_v38, inf }
 0x15e   : > { %v1131_v51 = vadd.f32 %v1130_v12, %v1116_v36  ;;  %v1171_v23 = vadd.f32 %v1170_v41, %v1156_v47  ;;  %vm2381_vm3 = vcmp.ne.s32.totalorder %v1846_v16, %v1799_v39  ;;  %vm925_vm15 = vcmp.eq.f32.partialorder %v1993_v1, 0.0 }
 0x15f   : > { %v1157_v62 = vsel %vm2381_vm3, %v913_v11, 0.0  ;;  %v943_v6 = vmul.f32 %v1528_v48, %v2031_v20  ;;  %v931_v22 = vsel %vm930_vm9, %v2002_v38, %v929_v34  ;;  %v927_v19 = vsel %vm925_vm15, %v926_v37, %v924_v45  ;;  %vm1105_vm15 = vmand %vm1032_vm0, %vm1088_vm4 }
 0x160   : > { %v933_v59 = vand.u32 2147483648, %v2002_v38  ;;  %v1132_v57 = vadd.f32 %v1131_v51, %v1117_v4  ;;  %v1172_v0 = vadd.f32 %v1171_v23, %v1157_v62  ;;  %v1118_v16 = vsel %vm1102_vm6, %v920_v50, 0.0 }
 0x161   : > { %v1158_v1 = vsel %vm1085_vm11, %v920_v50, 0.0  ;;  %v938_v42 = vsel %vm937_vm10, %v2013_v3, %v936_v43  ;;  %vm932_vm8 = vcmp.eq.f32.partialorder %v2002_v38, 0.0  ;;  %vm2382_vm1 = vcmp.eq.s32.totalorder %v2103_v30, %v1879_v49 }
 0x162   : > { %vm1103_vm7 = vmand %vm2382_vm1, %vm1086_vm5  ;;  %vm944_vm14 = vcmp.eq.f32.partialorder %v2031_v20, inf  ;;  %v934_v61 = vsel %vm932_vm8, %v933_v59, %v931_v22  ;;  %v1133_v26 = vadd.f32 %v1132_v57, %v1118_v16  ;;  %v1173_v27 = vadd.f32 %v1172_v0, %v1158_v1 }
 0x163   : > { %vm939_vm11 = vcmp.eq.f32.partialorder %v2013_v3, 0.0  ;;  %v1119_v11 = vsel %vm1103_vm7, %v927_v19, 0.0  ;;  %v1159_v38 = vsel %vm1086_vm5, %v927_v19, 0.0  ;;  %v945_v2 = vsel %vm944_vm14, %v2031_v20, %v943_v6 }
 0x164   : > { %vm2383_vm10 = vcmp.ne.s32.totalorder %v1858_v31, %v1799_v39  ;;  %vm2384_vm12 = vcmp.eq.s32.totalorder %v2179_v21, %v1879_v49  ;;  %v941_v30 = vsel %vm939_vm11, %v940_v13, %v938_v42  ;;  %v947_v5 = vand.u32 2147483648, %v2031_v20 }
 0x165   : > { %vm1104_vm13 = vmand %vm2384_vm12, %vm2383_vm10  ;;  %v1134_v52 = vadd.f32 %v1133_v26, %v1119_v11  ;;  %v1174_v56 = vadd.f32 %v1173_v27, %v1159_v38  ;;  %vm1033_vm9 = vcmp.eq.s32.totalorder %v1013_v63, %v1879_v49  ;;  %vm946_vm3 = vcmp.eq.f32.partialorder %v2031_v20, 0.0 }
 0x166   : > { %v1120_v14 = vsel %vm1104_vm13, %v934_v61, 0.0  ;;  %vm2385_vm5 = vmmov %vm2383_vm10  ;;  %v948_v7 = vsel %vm946_vm3, %v947_v5, %v945_v2  ;;  %v1121_v29 = vsel %vm1105_vm15, %v941_v30, 0.0  ;;  %v1161_v20 = vsel %vm1088_vm4, %v941_v30, 0.0 }
 0x167   : > { %v1160_v3 = vsel %vm2385_vm5, %v934_v61, 0.0  ;;  %v1135_v40 = vadd.f32 %v1134_v52, %v1120_v14  ;;  %vm1106_vm6 = vmand %vm1033_vm9, %vm1089_vm2  ;;  %v1162_v49 = vsel %vm1089_vm2, %v948_v7, 0.0 }
 0x168   : > { %v1175_v55 = vadd.f32 %v1174_v56, %v1160_v3  ;;  %v1122_v21 = vsel %vm1106_vm6, %v948_v7, 0.0 }
 0x169   : > { %v1136_v31 = vadd.f32 %v1135_v40, %v1121_v29 }
 0x16a   : > { %v1176_v8 = vadd.f32 %v1175_v55, %v1161_v20 }
 0x16b   : > { %v1137_v46 = vadd.f32 %v1136_v31, %v1122_v21 }
 0x16c   : > { %v1177_v53 = vadd.f32 %v1176_v8, %v1162_v49 }
 0x16d   : > { %v1138_v25 = vrot.slane %v1137_v46, 4 }
 0x16e   : > { %v1178_v9 = vrot.slane %v1177_v53, 4 }
 0x16f   : > { %v1139_v10 = vadd.f32 %v1138_v25, %v1137_v46 }
 0x170   : > { %v1179_v28 = vadd.f32 %v1178_v9, %v1177_v53 }
 0x171   : > { %v1140_v13 = vrot.slane %v1139_v10, 2 }
 0x172   : > { %v1180_v32 = vrot.slane %v1179_v28, 2 }
 0x173   : > { %v1141_v58 = vadd.f32 %v1140_v13, %v1139_v10 }
 0x174   : > { %v1181_v44 = vadd.f32 %v1180_v32, %v1179_v28 }
 0x175   : > { %v1142_v54 = vrot.slane %v1141_v58, 1 }
 0x176   : > { %v1182_v4 = vrot.slane %v1181_v44, 1 }
 0x177   : > { %v1143_v24 = vadd.f32 %v1142_v54, %v1141_v58 }
 0x178   : > { %v1183_v60 = vadd.f32 %v1182_v4, %v1181_v44  ;;  %1189 = sbr.rel (%p1370_p9) target bundleno = 415 (0x19f), region = 60 }
 0x179   : > { %v1144_v33 = vadd.f32 %v1143_v24, %v1090_v17 }
 0x17a   : > { %v1184_v35 = vadd.f32 %v1183_v60, %v1146_v18 }
 0x17b   : > { %1145 = vst [vmem:[#allocation2] sm:$0x1] %v1144_v33 }
 0x17c   : > { %1185 = vst [vmem:[#allocation3] sm:$0x1] %v1184_v35 }
 0x17d   : > { %v1191_v15 = vld [vmem:[%s431_s1] sm:$0x1] }
 0x17e   : > { %v1195_v12 = vld [vmem:[%s434_s10] sm:$0x1] }
 0x182   : > { %v1190_v39 = vld [vmem:[#allocation2] sm:$0x1] }
 0x183   : > { %v1193_v34 = vld [vmem:[#allocation3] sm:$0x1]  ;;  %v1192_v48 = vmul.f32 %v1191_v15, %v1190_v39 }
 0x184   : > { %v1194_v37 = vsub.f32 %v1193_v34, %v1190_v39 }
 0x185   : > { %v1197_v36 = vmul.f32 1.442695, %v1192_v48 }
 0x186   : > { %v1196_v41 = vmul.f32 %v1195_v12, %v1194_v37 }
 0x187   : > { %1529 = vpow2.f32 %v1197_v36 }
 0x188   : > { %v1200_v47 = vmul.f32 -1.0, %v1196_v41 }
 0x18a   : > { %v1201_v43 = vmul.f32 1.442695, %v1200_v47 }
 0x18c   : > { %1531 = vpow2.f32 %v1201_v43 }
 0x194   : > { %v1530_v45 = vpop.eup %1529 }
 0x195   : > { %v1199_v50 = vmul.f32 0.8, %v1530_v45 }
 0x199   : > { %v1532_v51 = vpop.eup %1531 }
 0x19a   : > { %v1203_v23 = vmul.f32 0.2, %v1532_v51 }
 0x19c   : > { %v1204_v62 = vadd.f32 %v1203_v23, %v1199_v50 }
 0x19e   : > { %1205 = vst [vmem:[%s437_s22] sm:$0x1] %v1204_v62 }
 0x19f PF: > { %s18_s9 = sadd.s32 1, %s1571_s9   ;;  %s2386_s28 = sld [smem:[#allocation4_spill]] }
 0x1a0   : > { %p15_p10 = scmp.ge.s32.totalorder %s18_s9, 6   ;;  %s2387_s10 = sld [smem:[#allocation5_spill]] }
 0x1a1   : > { %s2388_s30 = sld [smem:[#allocation6_spill]]  ;;  %s2389_s27 = smov %s1563_s29 }
 0x1a2   :  { %17 = sbr.rel (!%p15_p10) target bundleno = 4 (0x4), region = 111 }
 0x1a6   : > { %s2390_s29 = smov %s2387_s10 }

</bundles_post_ra>
